<compile_context>
chip_gen: v5e
topology: v5e:2x2
jax: 0.10.0
libtpu: 0.0.40
codegen_flags: <defaults>
</compile_context>

<pallas_src>
import jax
import jax.numpy as jnp
from jax.experimental import pallas as pl
from jax.experimental.pallas import tpu as pltpu


def _onedlayer_kernel(x_ref, scale_ref, o_ref):
    # Clamp semantics of the PyTorch module:
    #   if x > 1.0  -> x = 1.0
    #   if x < -1.0 -> x = -1.0
    x = jnp.minimum(jnp.maximum(x_ref[0], jnp.float32(-1.0)), jnp.float32(1.0))
    # Branch on t was hoisted to the host; here it is just a scale.
    o_ref[0] = x * scale_ref[0]


@jax.jit
def _onedlayer_pallas(x_arr, scale_arr):
    return pl.pallas_call(
        _onedlayer_kernel,
        out_shape=jax.ShapeDtypeStruct((1,), jnp.float32),
        in_specs=[
            pl.BlockSpec(memory_space=pltpu.SMEM),
            pl.BlockSpec(memory_space=pltpu.SMEM),
        ],
        out_specs=pl.BlockSpec(memory_space=pltpu.SMEM),
    )(x_arr, scale_arr)


def onedlayer_forward(x_param, t):
    """x_param: f32[1] parameter, t: Python int step counter -> f32[1].

    The t-dependent branch is resolved on the host (Python modulo, which
    matches the PyTorch/Python reference semantics for negative t as well),
    so the kernel only sees a clamp + scale.
    """
    scale = 1010.0 if (t % 101 == 1) else -10.0
    x_arr = jnp.asarray(x_param, dtype=jnp.float32).reshape((1,))
    scale_arr = jnp.asarray([scale], dtype=jnp.float32)
    return _onedlayer_pallas(x_arr, scale_arr)


def _reference(x_param, t):
    x = float(jnp.asarray(x_param).reshape(()))
    if x > 1.0:
        x = 1.0
    if x < -1.0:
        x = -1.0
    if t % 101 == 1:
        return x * 1010.0
    return -10.0 * x


if __name__ == "__main__":
    key = jax.random.PRNGKey(0)
    # Deterministic parameter init (module __init__ takes a scalar x);
    # draw it in [-2, 2] so the clamp path is meaningfully exercised.
    x_param = jax.random.uniform(key, (1,), jnp.float32, minval=-2.0, maxval=2.0)

    ok = True
    # t % 101 == 1 fires for t = 1 and t = 102; also check a negative t to
    # exercise the host-side (Python) modulo semantics.
    for t in (0, 1, 102, 7, -100):
        out = jax.block_until_ready(onedlayer_forward(x_param, t))
        ref = _reference(x_param, t)
        if abs(float(out[0]) - ref) > 1e-4 * (1.0 + abs(ref)):
            ok = False

    if ok:
        print("KERNEL_OK")
</pallas_src>

<mosaic_0001>
module attributes {stable_mosaic.version = 11 : i64} {
  func.func @_onedlayer_kernel(%arg0: memref<1xf32, #tpu.memory_space<smem>>, %arg1: memref<1xf32, #tpu.memory_space<smem>>, %arg2: memref<1xf32, #tpu.memory_space<smem>>) attributes {dimension_semantics = [], scalar_prefetch = 0 : i64, scratch_operands = 0 : i64, tpu.core_type = #tpu.core_type<tc>} {
    %c0 = arith.constant 0 : index
    %0 = memref.load %arg0[%c0] : memref<1xf32, #tpu.memory_space<smem>>
    %cst = arith.constant -1.000000e+00 : f32
    %1 = arith.maximumf %0, %cst : f32
    %cst_0 = arith.constant 1.000000e+00 : f32
    %2 = arith.minimumf %1, %cst_0 : f32
    %c0_1 = arith.constant 0 : index
    %3 = memref.load %arg1[%c0_1] : memref<1xf32, #tpu.memory_space<smem>>
    %4 = arith.mulf %2, %3 : f32
    %c0_2 = arith.constant 0 : index
    %5 = memref.load %arg2[%c0_2] : memref<1xf32, #tpu.memory_space<smem>>
    memref.store %4, %arg2[%c0_2] : memref<1xf32, #tpu.memory_space<smem>>
    return
  }
}

</mosaic_0001>

<bundles_post_ra>
// kernel: _onedlayer_pallas.1
= control target key start
LH: loop header
LB: loop body
LE: loop exit
PB: predicated region body
PF: predicated region fallthrough
CT: control target
= control target key end

     0   :  { %9 = vsyncpa [#allocation5], 0  ;;  %s53_s9 = smov -1.0   ;;  %s54_s16 = smov 1.0   ;;  %s80_s0 = inlined_call_operand.<no memory space> [shape: f32[1], index: 0, kind: input, shape index: {}]   ;;  %s81_s1 = inlined_call_operand.<no memory space> [shape: f32[1], index: 1, kind: input, shape index: {}]   ;;  %s82_s2 = inlined_call_operand.hbm [shape: f32[1], index: 2, kind: output, shape index: {}]  }
   0x1   :  { %s15_s12 = smax.f32 %s53_s9, %s80_s0  ;;  %s26_s15 = sshll.u32 %s82_s2, 4  ;;  %s27_s15 = int_to_ptr.hbm [resolvable:$true] %s26_s15 }
   0x2   :  { %s16_s17 = smin.f32 %s54_s16, %s15_s12  ;;  %s55_s21 = smov [#allocation4]  }
   0x3   :  { %s18_s20 = smul.f32 %s16_s17, %s81_s1 }
   0x5   :  { %20 = sst [smem:[#allocation4]] %s18_s20 }
   0x6   :  { %29 = dma.smem_to_hbm %s55_s21, 16, %s27_s15, [#allocation5]  }
   0x7   :  { %51 = dma.done.wait [#allocation5], 16  }
   0x8   :  { %52 = vsyncadd [#allocation5], 4294967280 }
   0x9   :  { %34 = sfence }
   0xa   :  { %35 = vsyncpa [#allocation5], 1 }

</bundles_post_ra>
